<compile_context>
chip_gen: v5e
topology: v5e:2x2
jax: 0.10.0
libtpu: 0.0.40
codegen_flags: <defaults>
</compile_context>

<pallas_src>
import functools
import math

import jax
import jax.numpy as jnp
from jax import lax
from jax.experimental import pallas as pl
from jax.experimental.pallas import tpu as pltpu

# Large *finite* mask value: exp(mask - m) underflows to exactly 0, and a row
# that is (hypothetically) fully masked in its first processed tile produces
# finite garbage that is annihilated by the next alpha rescale, never a NaN.
_MASK_VALUE = -0.7 * float(jnp.finfo(jnp.float32).max)


def _round_up(n, m):
    return ((n + m - 1) // m) * m


def _pick_row_tile(rows, target=512):
    """Largest row tile <= target that evenly divides `rows` (rows % 8 == 0)."""
    for t in (512, 256, 128, 64, 32, 16, 8):
        if t <= target and rows % t == 0:
            return t
    return rows


def _seq_tiling(seq_len):
    """Return (tile, padded_seq): tile % 8 == 0 and padded_seq % tile == 0."""
    if seq_len <= 512:
        t = _round_up(seq_len, 8)
        return t, t
    for t in (512, 256):
        if seq_len % t == 0:
            return t, seq_len
    # Awkward lengths: pad up to a multiple of 256 instead of letting per-step
    # VMEM scale as T^2.
    return 256, _round_up(seq_len, 256)


# ---------------------------------------------------------------------------
# Kernel 1: fused QKV projection
# ---------------------------------------------------------------------------
def _qkv_proj_kernel(x_ref, w_ref, q_ref, k_ref, v_ref):
    # x_ref: (tm, d_in); w_ref: (d_in, 3*dp) with Q weights pre-scaled.
    qkv = jnp.dot(x_ref[...], w_ref[...], preferred_element_type=jnp.float32)
    d = q_ref.shape[-1]          # dp, a multiple of 128 -> lane-aligned splits
    q_ref[...] = qkv[:, :d].astype(q_ref.dtype)
    k_ref[...] = qkv[:, d:2 * d].astype(k_ref.dtype)
    v_ref[...] = qkv[:, 2 * d:].astype(v_ref.dtype)


def _qkv_projection(x2d, w_qkv, dp, out_dtype):
    rows, d_in = x2d.shape
    tm = _pick_row_tile(rows)
    out = jax.ShapeDtypeStruct((rows, dp), out_dtype)

    grid_spec = pltpu.PrefetchScalarGridSpec(
        num_scalar_prefetch=0,
        grid=(rows // tm,),
        in_specs=[
            pl.BlockSpec((tm, d_in), lambda i: (i, 0)),
            pl.BlockSpec((d_in, 3 * dp), lambda i: (0, 0)),
        ],
        out_specs=[
            pl.BlockSpec((tm, dp), lambda i: (i, 0)),
            pl.BlockSpec((tm, dp), lambda i: (i, 0)),
            pl.BlockSpec((tm, dp), lambda i: (i, 0)),
        ],
    )
    return pl.pallas_call(
        _qkv_proj_kernel,
        out_shape=(out, out, out),
        grid_spec=grid_spec,
        compiler_params=pltpu.CompilerParams(
            dimension_semantics=("parallel",)),
    )(x2d, w_qkv)


# ---------------------------------------------------------------------------
# Kernel 2: flash-style causal attention (online softmax)
# ---------------------------------------------------------------------------
def _attn_kernel(q_ref, k_ref, v_ref, o_ref, m_sc, l_sc, acc_sc, *, tile):
    qi = pl.program_id(1)
    kj = pl.program_id(2)

    @pl.when(kj == 0)
    def _init():
        m_sc[...] = jnp.full_like(m_sc, _MASK_VALUE)
        l_sc[...] = jnp.zeros_like(l_sc)
        acc_sc[...] = jnp.zeros_like(acc_sc)

    def _scores():
        # Q @ K^T via contraction on the feature axis: no explicit transpose.
        return lax.dot_general(
            q_ref[0], k_ref[0],
            dimension_numbers=(((1,), (1,)), ((), ())),
            preferred_element_type=jnp.float32)          # (tile, tile)

    def _update(s):
        m_prev = m_sc[...]
        m_new = jnp.maximum(m_prev, jnp.max(s, axis=-1, keepdims=True))
        alpha = jnp.exp(m_prev - m_new)
        p = jnp.exp(s - m_new)
        l_sc[...] = alpha * l_sc[...] + jnp.sum(p, axis=-1, keepdims=True)
        acc_sc[...] = alpha * acc_sc[...] + jnp.dot(
            p.astype(v_ref.dtype), v_ref[0],
            preferred_element_type=jnp.float32)
        m_sc[...] = m_new

    # Interior tiles (fully visible): no iota / compare / select at all.
    @pl.when(kj < qi)
    def _interior():
        _update(_scores())

    # Diagonal tile: apply the causal mask (local indices, since tq == tkv).
    # Tiles with kj > qi are entirely in the future: compute is skipped and
    # the clamped K/V index_map means they were never DMA'd either.
    @pl.when(kj == qi)
    def _diagonal():
        s = _scores()
        row = lax.broadcasted_iota(jnp.int32, s.shape, 0)
        col = lax.broadcasted_iota(jnp.int32, s.shape, 1)
        _update(jnp.where(col > row, _MASK_VALUE, s))

    @pl.when(kj == pl.num_programs(2) - 1)
    def _finalize():
        # Exact divide: runs once per (b, qi) tile, off the critical path.
        o_ref[0] = (acc_sc[...] / l_sc[...]).astype(o_ref.dtype)


def _flash_attention(q, k, v, tile, out_dtype):
    B, Tp, dp = q.shape
    n_tiles = Tp // tile

    kernel = functools.partial(_attn_kernel, tile=tile)

    # Clamp the K/V block index to the diagonal: future tiles reuse the
    # already-fetched diagonal block, so Pallas issues no DMA for them.
    def _kv_index(b, qi, kj):
        return (b, jnp.minimum(kj, qi), 0)

    grid_spec = pltpu.PrefetchScalarGridSpec(
        num_scalar_prefetch=0,
        grid=(B, n_tiles, n_tiles),
        in_specs=[
            pl.BlockSpec((1, tile, dp), lambda b, qi, kj: (b, qi, 0)),
            pl.BlockSpec((1, tile, dp), _kv_index),
            pl.BlockSpec((1, tile, dp), _kv_index),
        ],
        out_specs=pl.BlockSpec((1, tile, dp), lambda b, qi, kj: (b, qi, 0)),
        scratch_shapes=[
            pltpu.VMEM((tile, 1), jnp.float32),    # running max m
            pltpu.VMEM((tile, 1), jnp.float32),    # running denom l
            pltpu.VMEM((tile, dp), jnp.float32),   # accumulator
        ],
    )
    return pl.pallas_call(
        kernel,
        out_shape=jax.ShapeDtypeStruct((B, Tp, dp), out_dtype),
        grid_spec=grid_spec,
        compiler_params=pltpu.CompilerParams(
            # Batch and query-tile axes parallel; KV reduction axis last,
            # arbitrary.
            dimension_semantics=("parallel", "parallel", "arbitrary")),
    )(q, k, v)


# ---------------------------------------------------------------------------
# Public wrapper
# ---------------------------------------------------------------------------
def causal_attention(x, w_query, w_key, w_value):
    """x: (B, T, d_in); w_*: (d_in, d_out). Returns (B, T, d_out) in x.dtype."""
    B, T, d_in = x.shape
    d_out = w_query.shape[1]

    # Lane-dense feature dim: pad d_out to a multiple of 128.
    dp = _round_up(d_out, 128)
    # Seq tiling: one tile size for Q and KV (tq == tkv), pad T to a multiple.
    tile, Tp = _seq_tiling(T)

    # Fold the 1/sqrt(d_out) softmax scale into the Q weights (softmax of
    # (q*s) @ k^T == softmax((q @ k^T) * s)), pad to dp columns with zeros,
    # and fuse Q/K/V so the projection is one wide matmul.
    scale = 1.0 / math.sqrt(d_out)
    wq_scaled = (w_query.astype(jnp.float32) * scale).astype(w_query.dtype)

    def _pad_cols(w):
        return jnp.pad(w, ((0, 0), (0, dp - d_out)))

    w_qkv = jnp.concatenate(
        [_pad_cols(wq_scaled), _pad_cols(w_key), _pad_cols(w_value)], axis=1)

    # Pad the sequence; padded rows/cols are inert thanks to causality
    # (padded KV columns sit strictly in the future of every real query row).
    if Tp != T:
        x = jnp.pad(x, ((0, 0), (0, Tp - T), (0, 0)))

    q, k, v = _qkv_projection(x.reshape(B * Tp, d_in), w_qkv, dp, x.dtype)
    q = q.reshape(B, Tp, dp)
    k = k.reshape(B, Tp, dp)
    v = v.reshape(B, Tp, dp)

    out = _flash_attention(q, k, v, tile, x.dtype)
    return out[:, :T, :d_out]


def _reference(x, wq, wk, wv):
    """Pure-JAX reference mirroring the PyTorch forward (eval mode)."""
    q = x @ wq
    k = x @ wk
    v = x @ wv
    scores = jnp.einsum("btd,bsd->bts", q, k)
    T = x.shape[1]
    mask = jnp.triu(jnp.ones((T, T), dtype=bool), k=1)
    scores = jnp.where(mask[None], -jnp.inf, scores)
    weights = jax.nn.softmax(scores / math.sqrt(k.shape[-1]), axis=-1)
    return weights @ v


if __name__ == "__main__":
    # Small shapes consistent with the module: batch=2, seq=8, d_in=32, d_out=32
    B, T, D_IN, D_OUT = 2, 8, 32, 32

    key = jax.random.PRNGKey(0)
    kx, kq, kk, kv = jax.random.split(key, 4)

    x = jax.random.normal(kx, (B, T, D_IN), dtype=jnp.float32)
    bound = 1.0 / math.sqrt(D_IN)
    w_query = jax.random.uniform(kq, (D_IN, D_OUT), jnp.float32, -bound, bound)
    w_key = jax.random.uniform(kk, (D_IN, D_OUT), jnp.float32, -bound, bound)
    w_value = jax.random.uniform(kv, (D_IN, D_OUT), jnp.float32, -bound, bound)

    out = causal_attention(x, w_query, w_key, w_value)
    out = jax.block_until_ready(out)

    ref = _reference(x, w_query, w_key, w_value)
    assert out.shape == (B, T, D_OUT)
    max_diff = jnp.max(jnp.abs(out - ref))
    assert jnp.allclose(out, ref, atol=1e-4, rtol=1e-4), (
        f"max abs diff {max_diff}")

    print("KERNEL_OK")
</pallas_src>

<mosaic_0001>
module attributes {stable_mosaic.version = 11 : i64} {
  func.func @_qkv_proj_kernel(%arg0: i32, %arg1: memref<16x32xf32, #tpu.memory_space<vmem>>, %arg2: memref<32x384xf32, #tpu.memory_space<vmem>>, %arg3: memref<16x128xf32, #tpu.memory_space<vmem>>, %arg4: memref<16x128xf32, #tpu.memory_space<vmem>>, %arg5: memref<16x128xf32, #tpu.memory_space<vmem>>) attributes {dimension_semantics = [#tpu.dimension_semantics<parallel>], iteration_bounds = array<i64: 1>, scalar_prefetch = 0 : i64, scratch_operands = 0 : i64, tpu.core_type = #tpu.core_type<tc>, window_params = [{transform_indices = @transform_0, window_bounds = array<i64: 16, 32>}, {pipeline_mode = #tpu.pipeline_mode<synchronous>, transform_indices = @transform_1, window_bounds = array<i64: 32, 384>}, {transform_indices = @transform_2, window_bounds = array<i64: 16, 128>}, {transform_indices = @transform_3, window_bounds = array<i64: 16, 128>}, {transform_indices = @transform_4, window_bounds = array<i64: 16, 128>}]} {
    %c0 = arith.constant 0 : index
    %c0_0 = arith.constant 0 : index
    %0 = vector.load %arg1[%c0, %c0_0] : memref<16x32xf32, #tpu.memory_space<vmem>>, vector<16x32xf32>
    %c0_1 = arith.constant 0 : index
    %c0_2 = arith.constant 0 : index
    %1 = vector.load %arg2[%c0_1, %c0_2] : memref<32x384xf32, #tpu.memory_space<vmem>>, vector<32x384xf32>
    %cst = arith.constant dense<0.000000e+00> : vector<16x384xf32>
    %2 = tpu.matmul %0, %1, %cst {dimension_numbers = #tpu.dot_dimension_numbers<[1], [0], [0], [1], [0, 0, 1, 1], [], []>} : vector<16x32xf32>, vector<32x384xf32>, vector<16x384xf32> -> vector<16x384xf32>
    %3 = vector.extract_strided_slice %2 {offsets = [0, 0], sizes = [16, 128], strides = [1, 1]} : vector<16x384xf32> to vector<16x128xf32>
    %c0_3 = arith.constant 0 : index
    %c0_4 = arith.constant 0 : index
    %4 = vector.load %arg3[%c0_3, %c0_4] : memref<16x128xf32, #tpu.memory_space<vmem>>, vector<16x128xf32>
    tpu.vector_store %arg3[%c0_3, %c0_4], %3 {strides = array<i32>} : memref<16x128xf32, #tpu.memory_space<vmem>>, vector<16x128xf32>,
    %5 = vector.extract_strided_slice %2 {offsets = [0, 128], sizes = [16, 128], strides = [1, 1]} : vector<16x384xf32> to vector<16x128xf32>
    %c0_5 = arith.constant 0 : index
    %c0_6 = arith.constant 0 : index
    %6 = vector.load %arg4[%c0_5, %c0_6] : memref<16x128xf32, #tpu.memory_space<vmem>>, vector<16x128xf32>
    tpu.vector_store %arg4[%c0_5, %c0_6], %5 {strides = array<i32>} : memref<16x128xf32, #tpu.memory_space<vmem>>, vector<16x128xf32>,
    %7 = vector.extract_strided_slice %2 {offsets = [0, 256], sizes = [16, 128], strides = [1, 1]} : vector<16x384xf32> to vector<16x128xf32>
    %c0_7 = arith.constant 0 : index
    %c0_8 = arith.constant 0 : index
    %8 = vector.load %arg5[%c0_7, %c0_8] : memref<16x128xf32, #tpu.memory_space<vmem>>, vector<16x128xf32>
    tpu.vector_store %arg5[%c0_7, %c0_8], %7 {strides = array<i32>} : memref<16x128xf32, #tpu.memory_space<vmem>>, vector<16x128xf32>,
    return
  }
  func.func @transform_0(%arg0: i32) -> (i32, i32) {
    %c0_i32 = arith.constant 0 : i32
    %c0_i32_0 = arith.constant 0 : i32
    return %arg0, %c0_i32 : i32, i32
  }
  func.func @transform_1(%arg0: i32) -> (i32, i32) {
    %c0_i32 = arith.constant 0 : i32
    %c0_i32_0 = arith.constant 0 : i32
    %c0_i32_1 = arith.constant 0 : i32
    return %c0_i32, %c0_i32_0 : i32, i32
  }
  func.func @transform_2(%arg0: i32) -> (i32, i32) {
    %c0_i32 = arith.constant 0 : i32
    %c0_i32_0 = arith.constant 0 : i32
    return %arg0, %c0_i32 : i32, i32
  }
  func.func @transform_3(%arg0: i32) -> (i32, i32) {
    %c0_i32 = arith.constant 0 : i32
    %c0_i32_0 = arith.constant 0 : i32
    return %arg0, %c0_i32 : i32, i32
  }
  func.func @transform_4(%arg0: i32) -> (i32, i32) {
    %c0_i32 = arith.constant 0 : i32
    %c0_i32_0 = arith.constant 0 : i32
    return %arg0, %c0_i32 : i32, i32
  }
}

</mosaic_0001>

<bundles_post_ra>
// kernel: tpu_custom_call.1
= control target key start
LH: loop header
LB: loop body
LE: loop exit
PB: predicated region body
PF: predicated region fallthrough
CT: control target
= control target key end

     0   :  { %10 = vsyncpa [#allocation3], 0  ;;  %s413_s0 = inlined_call_operand.hbm [shape: f32[16,32], index: 0, kind: input, shape index: {}]   ;;  %s414_s1 = inlined_call_operand.hbm [shape: f32[32,384], index: 1, kind: input, shape index: {}]   ;;  %s415_s2 = inlined_call_operand.hbm [shape: f32[16,128], index: 2, kind: output, shape index: {0}]   ;;  %s416_s3 = inlined_call_operand.hbm [shape: f32[16,128], index: 3, kind: output, shape index: {1}]   ;;  %s417_s4 = inlined_call_operand.hbm [shape: f32[16,128], index: 4, kind: output, shape index: {2}]  }
   0x1   :  { %11 = vsyncpa [#allocation6], 0 }
   0x2   :  { %12 = vsyncpa [#allocation4], 0 }
   0x3   :  { %13 = vsyncpa [#allocation9], 0  ;;  %s18_s17 = sshll.u32 %s413_s0, 4  ;;  %s346_s18 = smov [#allocation2]   ;;  %s19_s17 = int_to_ptr.hbm [resolvable:$true] %s18_s17 }
   0x4   :  { %s20_s19 = sshll.u32 %s346_s18, 4  ;;  %s31_s22 = sshll.u32 %s414_s1, 4  ;;  %s21_s19 = int_to_ptr.vmem [resolvable:$true] %s20_s19  ;;  %s32_s22 = int_to_ptr.hbm [resolvable:$true] %s31_s22 }
   0x5   :  { %s347_s23 = smov 128   ;;  %s348_s24 = smov 8  }
   0x6   :  { %26 = dma.hbm_to_vmem [thread:$0]  %s19_s17, 256, %s21_s19, [#allocation3], %s347_s23, %s347_s23, %s348_s24  }
   0x7   :  { %s349_s25 = smov [#allocation5]   ;;  %s350_s27 = smov 384  }
   0x8   :  { %s33_s26 = sshll.u32 %s349_s25, 4  ;;  %s351_s0 = smov 24   ;;  %s34_s26 = int_to_ptr.vmem [resolvable:$true] %s33_s26 }
   0x9   :  { %39 = dma.hbm_to_vmem [thread:$0]  %s32_s22, 1536, %s34_s26, [#allocation6], %s350_s27, %s350_s27, %s351_s0  }
   0xa   :  { %338 = dma.done.wait [#allocation3], 256  }
   0xb   :  { %339 = vsyncadd [#allocation3], 4294967040 }
   0xc   :  { %340 = dma.done.wait [#allocation6], 1536  }
   0xd   :  { %341 = vsyncadd [#allocation6], 4294965760  ;;  %v61_v0 = vld [vmem:[#allocation5 + $0x58] sm:$0xff]  ;;  %v58_v1 = vld [vmem:[#allocation5 + $0x40] sm:$0xff]  ;;  %vm62_vm0 = vcmask 261120   ;;  %s352_s1 = smov [#allocation7]  }
   0xe   :  { %127 = vmatpush.msra.mxu2 %v61_v0  ;;  %v60_v2 = vld [vmem:[#allocation5 + $0x50] sm:$0xff]  ;;  %v57_v3 = vld [vmem:[#allocation5 + $0x38] sm:$0xff]  ;;  %v55_v4 = vld [vmem:[#allocation5 + $0x28] sm:$0xff]  ;;  %s148_s28 = sshll.u32 %s352_s1, 4  ;;  %s150_s5 = sshll.u32 %s415_s2, 4  ;;  %s149_s28 = int_to_ptr.vmem [resolvable:$true] %s148_s28  ;;  %s151_s5 = int_to_ptr.hbm [resolvable:$true] %s150_s5 }
   0xf   :  { %104 = vmatpush.msra.mxu1 %v60_v2  ;;  %v59_v5 = vld [vmem:[#allocation5 + $0x48] sm:$0xff]  ;;  %v54_v6 = vld [vmem:[#allocation5 + $0x20] sm:$0xff]  ;;  %v56_v7 = vld [vmem:[#allocation5 + $0x30] sm:$0xff]  ;;  %s353_s6 = smov [#allocation8]   ;;  %s163_s10 = sshll.u32 %s416_s3, 4  ;;  %s164_s10 = int_to_ptr.hbm [resolvable:$true] %s163_s10 }
  0x10   :  { %128 = vmatpush.msra.mxu2 %v58_v1  ;;  %205 = vmatpush.msra.mxu3 %v59_v5  ;;  %v52_v8 = vld [vmem:[#allocation5 + $0x10] sm:$0xff]  ;;  %v53_v9 = vld [vmem:[#allocation5 + $0x18] sm:$0xff]  ;;  %v51_v11 = vld [vmem:[#allocation5 + $0x8] sm:$0xff]  ;;  %s161_s7 = sshll.u32 %s353_s6, 4  ;;  %s354_s11 = smov [#allocation10]   ;;  %s162_s7 = int_to_ptr.vmem [resolvable:$true] %s161_s7 }
  0x11   :  { %105 = vmatpush.msra.mxu1 %v57_v3  ;;  %81 = vmatpush.msra.mxu0 %v59_v5  ;;  %v48_v10 = vld [vmem:[#allocation2] sm:$0xff]  ;;  %v50_v12 = vld [vmem:[#allocation5] sm:$0xff]  ;;  %v49_v13 = vld [vmem:[#allocation2 + $0x8] sm:$0xff]  ;;  %s174_s12 = sshll.u32 %s354_s11, 4  ;;  %s176_s14 = sshll.u32 %s417_s4, 4  ;;  %s175_s12 = int_to_ptr.vmem [resolvable:$true] %s174_s12  ;;  %s177_s14 = int_to_ptr.hbm [resolvable:$true] %s176_s14 }
  0x12   :  { %129 = vmatpush.msra.mxu2 %v55_v4  ;;  %206 = vmatpush.msra.mxu3 %v56_v7 }
  0x13   :  { %106 = vmatpush.msra.mxu1 %v54_v6  ;;  %82 = vmatpush.msra.mxu0 %v56_v7 }
  0x14   :  { %130 = vmatpush.msra.mxu2 %v52_v8  ;;  %207 = vmatpush.msra.mxu3 %v53_v9 }
  0x15   :  { %203 = vmatmul.msk.f32.vlgmr.msra.gmra.mxu2 %vm62_vm0, %v48_v10  ;;  %107 = vmatpush.msra.mxu1 %v51_v11 }
  0x16   :  { %201 = vmatmul.msk.f32.vlgmr.msra.gmra.mxu1 %vm62_vm0, %v48_v10  ;;  %208 = vmatpush.msra.mxu3 %v50_v12 }
  0x17   :  { %200 = vmatmul.msk.f32.vlgmr.msra.gmra.mxu3 %vm62_vm0, %v49_v13  ;;  %83 = vmatpush.msra.mxu0 %v53_v9 }
  0x19   :  { %84 = vmatpush.msra.mxu0 %v50_v12 }
  0x1a   :  { %199 = vmatmul.msk.f32.vlgmr.msra.gmra.mxu0 %vm62_vm0, %v48_v10 }
  0x1d   :  { %204 = vmatmul.msk.f32.gmra.mxu2 %vm62_vm0, %v49_v13 }
  0x1e   :  { %202 = vmatmul.msk.f32.gmra.mxu1 %vm62_vm0, %v49_v13 }
  0x93   :  { %v109_v14 = vpop.f32.mrf.mxu1 }
  0x94   :  { %140 = vst [vmem:[#allocation8] sm:$0xff] %v109_v14 }
  0x97   :  { %v86_v15 = vpop.f32.mrf.mxu0 }
  0x98   :  { %v132_v16 = vpop.f32.mrf.mxu2  ;;  %138 = vst [vmem:[#allocation7] sm:$0xff] %v86_v15 }
  0x99   :  { %142 = vst [vmem:[#allocation10] sm:$0xff] %v132_v16 }
  0x9a   :  { %v89_v17 = vpop.f32.mrf.mxu3 }
  0x9b   :  { %v112_v18 = vpop.f32.mrf.mxu1  ;;  %139 = vst [vmem:[#allocation7 + $0x8] sm:$0xff] %v89_v17 }
  0x9c   :  { %141 = vst [vmem:[#allocation8 + $0x8] sm:$0xff] %v112_v18  ;;  %156 = dma.vmem_to_hbm [thread:$0]  %s149_s28, 256, %s151_s5, [#allocation4], %s347_s23, %s347_s23, %s348_s24  }
  0x9d   :  { %169 = dma.vmem_to_hbm [thread:$0]  %s162_s7, 256, %s164_s10, [#allocation9], %s347_s23, %s347_s23, %s348_s24  }
  0xa0   :  { %v135_v19 = vpop.f32.mrf.mxu2 }
  0xa1   :  { %143 = vst [vmem:[#allocation10 + $0x8] sm:$0xff] %v135_v19 }
  0xa2   :  { %182 = dma.vmem_to_hbm [thread:$0]  %s175_s12, 256, %s177_s14, [#allocation9], %s347_s23, %s347_s23, %s348_s24  }
  0xa3   :  { %342 = dma.done.wait [#allocation4], 256  }
  0xa4   :  { %343 = vsyncadd [#allocation4], 4294967040 }
  0xa5   :  { %344 = dma.done.wait [#allocation9], 512  }
  0xa6   :  { %345 = vsyncadd [#allocation9], 4294966784 }
  0xa7   :  { %195 = vsyncpa [#allocation3], 1 }
  0xa8   :  { %196 = vsyncpa [#allocation6], 1 }
  0xa9   :  { %197 = vsyncpa [#allocation4], 1 }
  0xaa   :  { %198 = vsyncpa [#allocation9], 1 }

</bundles_post_ra>
